<compile_context>
chip_gen: v6e
topology: v6e:2x2x1
jax: 0.10.0
libtpu: 0.0.40
codegen_flags: <defaults>
</compile_context>

<pallas_src>
import math

import jax
import jax.numpy as jnp
from jax import lax
from jax.experimental import pallas as pl
from jax.experimental.pallas import tpu as pltpu

EPS = 1e-8
THRESHOLD = 3.0


def _pair(v):
    return (v, v) if isinstance(v, int) else tuple(v)


def _round_up(v, m):
    return ((v + m - 1) // m) * m


# ----------------------------- Pallas kernels ------------------------------

def _vdrop_train_kernel(a_ref, wmu_ref, wsig2_ref, b_ref, noise_ref, o_ref,
                        acc_mu_ref, acc_var_ref):
    k_step = pl.program_id(1)

    @pl.when(k_step == 0)
    def _():
        acc_mu_ref[...] = jnp.zeros_like(acc_mu_ref)
        acc_var_ref[...] = jnp.zeros_like(acc_var_ref)

    a = a_ref[...]                                                 # (TM, TK)
    # Two back-to-back MXU dots; all weight-side transforms hoisted to wrapper.
    acc_mu_ref[...] += jnp.dot(a, wmu_ref[...],
                               preferred_element_type=jnp.float32)
    acc_var_ref[...] += jnp.dot(a * a, wsig2_ref[...],
                                preferred_element_type=jnp.float32)

    @pl.when(k_step == pl.num_programs(1) - 1)
    def _():
        y_sigma = jnp.sqrt(jnp.maximum(acc_var_ref[...], EPS))
        o_ref[...] = acc_mu_ref[...] + b_ref[...] + noise_ref[...] * y_sigma


def _vdrop_eval_kernel(a_ref, w_ref, b_ref, o_ref, acc_ref):
    k_step = pl.program_id(1)

    @pl.when(k_step == 0)
    def _():
        acc_ref[...] = jnp.zeros_like(acc_ref)

    acc_ref[...] += jnp.dot(a_ref[...], w_ref[...],
                            preferred_element_type=jnp.float32)

    @pl.when(k_step == pl.num_programs(1) - 1)
    def _():
        o_ref[...] = acc_ref[...] + b_ref[...]


# ------------------------------- glue (JAX) --------------------------------

def _im2col(x, kernel_size, stride, padding, dilation):
    """x: (N,C,H,W) -> patches (N*OH*OW, C*KH*KW), K ordered (c, kh, kw)."""
    n, c, h, w = x.shape
    kh, kw = kernel_size
    sh, sw = stride
    ph, pw = padding
    dh, dw = dilation
    oh = (h + 2 * ph - dh * (kh - 1) - 1) // sh + 1
    ow = (w + 2 * pw - dw * (kw - 1) - 1) // sw + 1
    # One NCHW->NHWC transpose + spatial pad; each (kh,kw) tap is a strided
    # slice already in (n, oh, ow, c) element order, so the final reshape is
    # copy-free (no 6-D transpose pass).
    x_nhwc = jnp.pad(x.transpose(0, 2, 3, 1),
                     ((0, 0), (ph, ph), (pw, pw), (0, 0)))
    taps = []
    for i in range(kh):
        for j in range(kw):
            top, left = i * dh, j * dw
            taps.append(x_nhwc[:,
                               top: top + (oh - 1) * sh + 1: sh,
                               left: left + (ow - 1) * sw + 1: sw,
                               :])                                 # (n,oh,ow,c)
    cols = jnp.stack(taps, axis=-1)                                # (n,oh,ow,c,kh*kw)
    # TODO(synk): longer term, avoid materializing im2col entirely (implicit
    # im2col via a kh*kw reduction grid axis over shifted NHWC windows).
    return cols.reshape(n * oh * ow, c * kh * kw), oh, ow


def _choose_k_tile(k):
    """Pick TK (multiple of 128 when tiling) and the (possibly padded) K."""
    if k <= 1024:                      # small reduction dim: single K step
        return k, k
    for tk in (512, 256, 128):
        if k % tk == 0:
            return tk, k
    # TODO(synk): padding K costs one extra HBM pass over the im2col matrix;
    # could instead mask the ragged last K tile in-kernel.
    return 512, _round_up(k, 512)


class VDropConv2d:
    def __init__(self, in_channels, out_channels, kernel_size, stride=1,
                 padding=0, dilation=1, groups=1, bias=True, *, key):
        # TODO(synk): groups > 1 (grouped conv) not implemented in the kernel.
        assert groups == 1
        self.in_channels = in_channels
        self.out_channels = out_channels
        self.kernel_size = _pair(kernel_size)
        self.stride = _pair(stride)
        self.padding = _pair(padding)
        self.dilation = _pair(dilation)
        kh, kw = self.kernel_size
        # kaiming_normal_(mode='fan_out'): std = sqrt(2 / (out_channels*kh*kw))
        std = math.sqrt(2.0 / (out_channels * kh * kw))
        self.w_mu = std * jax.random.normal(
            key, (out_channels, in_channels, kh, kw), jnp.float32)
        self.w_logsigma2 = jnp.full(
            (out_channels, in_channels, kh, kw), -10.0, jnp.float32)
        self.bias = jnp.zeros((out_channels,), jnp.float32) if bias else None

    def __call__(self, x, training=True, rng_key=None):
        n = x.shape[0]
        o = self.out_channels
        cols, oh, ow = _im2col(x, self.kernel_size, self.stride,
                               self.padding, self.dilation)
        m, k = cols.shape

        tk, k_pad = _choose_k_tile(k)
        o_pad = _round_up(o, 128)           # lane-dense stores / MXU N fill
        # TODO(synk): sweep TM per generation (512 on v5e/v6e, 256 on v7x).
        tm = m if m <= 256 else 256

        if k_pad != k:
            cols = jnp.pad(cols, ((0, 0), (0, k_pad - k)))

        grid = (pl.cdiv(m, tm), k_pad // tk)   # (M parallel, K reduction last)

        a_spec = pl.BlockSpec((tm, tk), lambda i, kk: (i, kk))
        w_spec = pl.BlockSpec((tk, o_pad), lambda i, kk: (kk, 0))
        b_spec = pl.BlockSpec((1, o_pad), lambda i, kk: (0, 0))
        row_spec = pl.BlockSpec((tm, o_pad), lambda i, kk: (i, 0))

        bias = self.bias if self.bias is not None else jnp.zeros((o,), jnp.float32)
        bias_p = jnp.pad(bias, (0, o_pad - o)).reshape(1, o_pad)

        def _pad_w(w2d):                    # (K, O) -> (K_pad, O_pad), zeros
            return jnp.pad(w2d, ((0, k_pad - k), (0, o_pad - o)))

        cparams = pltpu.CompilerParams(
            dimension_semantics=("parallel", "arbitrary"),
            vmem_limit_bytes=32 * 1024 * 1024)

        if training:
            # Hoisted weight transform: exp() done once in XLA, not per tile.
            wmu2d = _pad_w(self.w_mu.reshape(o, k).T)
            wsig2d = _pad_w(jnp.exp(self.w_logsigma2).reshape(o, k).T)
            # Noise generated directly in (M, O_pad) layout: no transpose/pad
            # HBM passes.  TODO(synk): torch .normal_() RNG stream not
            # reproduced; could also be generated in-kernel via pltpu.prng_*.
            noise2d = jax.random.normal(rng_key, (m, o_pad), jnp.float32)
            out = pl.pallas_call(
                _vdrop_train_kernel,
                out_shape=jax.ShapeDtypeStruct((m, o_pad), jnp.float32),
                grid_spec=pltpu.PrefetchScalarGridSpec(
                    num_scalar_prefetch=0, grid=grid,
                    in_specs=[a_spec, w_spec, w_spec, b_spec, row_spec],
                    out_specs=row_spec,
                    scratch_shapes=[pltpu.VMEM((tm, o_pad), jnp.float32),
                                    pltpu.VMEM((tm, o_pad), jnp.float32)]),
                compiler_params=cparams,
            )(cols, wmu2d, wsig2d, bias_p, noise2d)
        else:
            # Hoisted mask: single pre-masked weight array -> half the weight
            # VMEM / DMA and no per-tile log/compare work.
            w_logalpha = self.w_logsigma2 - jnp.log(self.w_mu ** 2 + EPS)
            w_eff = self.w_mu * (w_logalpha < THRESHOLD).astype(jnp.float32)
            weff2d = _pad_w(w_eff.reshape(o, k).T)
            out = pl.pallas_call(
                _vdrop_eval_kernel,
                out_shape=jax.ShapeDtypeStruct((m, o_pad), jnp.float32),
                grid_spec=pltpu.PrefetchScalarGridSpec(
                    num_scalar_prefetch=0, grid=grid,
                    in_specs=[a_spec, w_spec, b_spec],
                    out_specs=row_spec,
                    scratch_shapes=[pltpu.VMEM((tm, o_pad), jnp.float32)]),
                compiler_params=cparams,
            )(cols, weff2d, bias_p)

        return out[:, :o].reshape(n, oh, ow, o).transpose(0, 3, 1, 2)  # NCHW


# ------------------------------ reference ----------------------------------

def _ref_conv(x, w, stride, padding, dilation):
    return lax.conv_general_dilated(
        x, w, window_strides=stride,
        padding=[(padding[0], padding[0]), (padding[1], padding[1])],
        rhs_dilation=dilation,
        dimension_numbers=("NCHW", "OIHW", "NCHW"),
        precision=lax.Precision.HIGHEST)


if __name__ == "__main__":
    key = jax.random.PRNGKey(0)
    k_w, k_x, k_noise = jax.random.split(key, 3)

    N, C, H, W = 2, 4, 16, 16
    O, KS, STRIDE, PAD, DIL = 8, 3, (1, 1), (1, 1), (1, 1)

    layer = VDropConv2d(C, O, KS, stride=STRIDE, padding=PAD, dilation=DIL,
                        bias=True, key=k_w)
    x = jax.random.normal(k_x, (N, C, H, W), jnp.float32)

    y_train = layer(x, training=True, rng_key=k_noise)
    y_eval = layer(x, training=False)
    jax.block_until_ready((y_train, y_eval))

    # --- pure-JAX references ---
    OH = (H + 2 * PAD[0] - DIL[0] * (KS - 1) - 1) // STRIDE[0] + 1
    OW = (W + 2 * PAD[1] - DIL[1] * (KS - 1) - 1) // STRIDE[1] + 1
    bias4 = layer.bias.reshape(1, O, 1, 1)

    y_mu_ref = _ref_conv(x, layer.w_mu, STRIDE, PAD, DIL) + bias4
    y_var_ref = _ref_conv(x * x, jnp.exp(layer.w_logsigma2), STRIDE, PAD, DIL)
    y_sigma_ref = jnp.sqrt(jnp.maximum(y_var_ref, EPS))
    # Same noise the kernel consumed: (M, O_pad) layout, valid O columns.
    M = N * OH * OW
    O_PAD = ((O + 127) // 128) * 128
    noise2d = jax.random.normal(k_noise, (M, O_PAD), jnp.float32)
    noise_nchw = noise2d[:, :O].reshape(N, OH, OW, O).transpose(0, 3, 1, 2)
    y_train_ref = y_mu_ref + noise_nchw * y_sigma_ref

    w_logalpha = layer.w_logsigma2 - jnp.log(layer.w_mu ** 2 + EPS)
    mask = (w_logalpha < THRESHOLD).astype(jnp.float32)
    y_eval_ref = _ref_conv(x, layer.w_mu * mask, STRIDE, PAD, DIL) + bias4

    assert y_train.shape == (N, O, OH, OW) and y_eval.shape == (N, O, OH, OW)
    assert jnp.allclose(y_train, y_train_ref, rtol=1e-3, atol=1e-3), "train mismatch"
    assert jnp.allclose(y_eval, y_eval_ref, rtol=1e-3, atol=1e-3), "eval mismatch"

    print("KERNEL_OK")
</pallas_src>

<mosaic_0001>
module attributes {stable_mosaic.version = 11 : i64} {
  func.func @_vdrop_train_kernel(%arg0: i32, %arg1: i32, %arg2: memref<256x36xf32, #tpu.memory_space<vmem>>, %arg3: memref<36x128xf32, #tpu.memory_space<vmem>>, %arg4: memref<36x128xf32, #tpu.memory_space<vmem>>, %arg5: memref<1x128xf32, #tpu.memory_space<vmem>>, %arg6: memref<256x128xf32, #tpu.memory_space<vmem>>, %arg7: memref<256x128xf32, #tpu.memory_space<vmem>>, %arg8: memref<256x128xf32, #tpu.memory_space<vmem>>, %arg9: memref<256x128xf32, #tpu.memory_space<vmem>>) attributes {dimension_semantics = [#tpu.dimension_semantics<parallel>, #tpu.dimension_semantics<arbitrary>], iteration_bounds = array<i64: 2, 1>, scalar_prefetch = 0 : i64, scratch_operands = 2 : i64, tpu.core_type = #tpu.core_type<tc>, window_params = [{transform_indices = @transform_0, window_bounds = array<i64: 256, 36>}, {transform_indices = @transform_1, window_bounds = array<i64: 36, 128>}, {transform_indices = @transform_2, window_bounds = array<i64: 36, 128>}, {pipeline_mode = #tpu.pipeline_mode<synchronous>, transform_indices = @transform_3, window_bounds = array<i64: 1, 128>}, {transform_indices = @transform_4, window_bounds = array<i64: 256, 128>}, {transform_indices = @transform_5, window_bounds = array<i64: 256, 128>}]} {
    %c0_i32 = arith.constant 0 : i32
    %0 = arith.cmpi eq, %arg1, %c0_i32 : i32
    %1 = arith.extui %0 : i1 to i32
    %c0_i32_0 = arith.constant 0 : i32
    %2 = arith.cmpi ne, %1, %c0_i32_0 : i32
    scf.if %2 {
      %cst_17 = arith.constant 0.000000e+00 : f32
      %18 = vector.broadcast %cst_17 : f32 to vector<256x128xf32>
      %c0_18 = arith.constant 0 : index
      %c0_19 = arith.constant 0 : index
      %19 = vector.load %arg8[%c0_18, %c0_19] : memref<256x128xf32, #tpu.memory_space<vmem>>, vector<256x128xf32>
      tpu.vector_store %arg8[%c0_18, %c0_19], %18 {strides = array<i32>} : memref<256x128xf32, #tpu.memory_space<vmem>>, vector<256x128xf32>,
      %cst_20 = arith.constant 0.000000e+00 : f32
      %20 = vector.broadcast %cst_20 : f32 to vector<256x128xf32>
      %c0_21 = arith.constant 0 : index
      %c0_22 = arith.constant 0 : index
      %21 = vector.load %arg9[%c0_21, %c0_22] : memref<256x128xf32, #tpu.memory_space<vmem>>, vector<256x128xf32>
      tpu.vector_store %arg9[%c0_21, %c0_22], %20 {strides = array<i32>} : memref<256x128xf32, #tpu.memory_space<vmem>>, vector<256x128xf32>,
    } else {
    }
    %c0 = arith.constant 0 : index
    %c0_1 = arith.constant 0 : index
    %3 = vector.load %arg2[%c0, %c0_1] : memref<256x36xf32, #tpu.memory_space<vmem>>, vector<256x36xf32>
    %c0_2 = arith.constant 0 : index
    %c0_3 = arith.constant 0 : index
    %4 = vector.load %arg8[%c0_2, %c0_3] : memref<256x128xf32, #tpu.memory_space<vmem>>, vector<256x128xf32>
    %c0_4 = arith.constant 0 : index
    %c0_5 = arith.constant 0 : index
    %5 = vector.load %arg3[%c0_4, %c0_5] : memref<36x128xf32, #tpu.memory_space<vmem>>, vector<36x128xf32>
    %cst = arith.constant dense<0.000000e+00> : vector<256x128xf32>
    %6 = tpu.matmul %3, %5, %cst {dimension_numbers = #tpu.dot_dimension_numbers<[1], [0], [0], [1], [0, 0, 1, 1], [], []>} : vector<256x36xf32>, vector<36x128xf32>, vector<256x128xf32> -> vector<256x128xf32>
    %7 = arith.addf %4, %6 : vector<256x128xf32>
    %c0_6 = arith.constant 0 : index
    %c0_7 = arith.constant 0 : index
    %8 = vector.load %arg8[%c0_6, %c0_7] : memref<256x128xf32, #tpu.memory_space<vmem>>, vector<256x128xf32>
    tpu.vector_store %arg8[%c0_6, %c0_7], %7 {strides = array<i32>} : memref<256x128xf32, #tpu.memory_space<vmem>>, vector<256x128xf32>,
    %c0_8 = arith.constant 0 : index
    %c0_9 = arith.constant 0 : index
    %9 = vector.load %arg9[%c0_8, %c0_9] : memref<256x128xf32, #tpu.memory_space<vmem>>, vector<256x128xf32>
    %10 = arith.mulf %3, %3 : vector<256x36xf32>
    %c0_10 = arith.constant 0 : index
    %c0_11 = arith.constant 0 : index
    %11 = vector.load %arg4[%c0_10, %c0_11] : memref<36x128xf32, #tpu.memory_space<vmem>>, vector<36x128xf32>
    %cst_12 = arith.constant dense<0.000000e+00> : vector<256x128xf32>
    %12 = tpu.matmul %10, %11, %cst_12 {dimension_numbers = #tpu.dot_dimension_numbers<[1], [0], [0], [1], [0, 0, 1, 1], [], []>} : vector<256x36xf32>, vector<36x128xf32>, vector<256x128xf32> -> vector<256x128xf32>
    %13 = arith.addf %9, %12 : vector<256x128xf32>
    %c0_13 = arith.constant 0 : index
    %c0_14 = arith.constant 0 : index
    %14 = vector.load %arg9[%c0_13, %c0_14] : memref<256x128xf32, #tpu.memory_space<vmem>>, vector<256x128xf32>
    tpu.vector_store %arg9[%c0_13, %c0_14], %13 {strides = array<i32>} : memref<256x128xf32, #tpu.memory_space<vmem>>, vector<256x128xf32>,
    %c0_i32_15 = arith.constant 0 : i32
    %15 = arith.cmpi eq, %arg1, %c0_i32_15 : i32
    %16 = arith.extui %15 : i1 to i32
    %c0_i32_16 = arith.constant 0 : i32
    %17 = arith.cmpi ne, %16, %c0_i32_16 : i32
    scf.if %17 {
      %c0_17 = arith.constant 0 : index
      %c0_18 = arith.constant 0 : index
      %18 = vector.load %arg9[%c0_17, %c0_18] : memref<256x128xf32, #tpu.memory_space<vmem>>, vector<256x128xf32>
      %cst_19 = arith.constant 9.99999993E-9 : f32
      %19 = vector.broadcast %cst_19 : f32 to vector<256x128xf32>
      %20 = arith.maximumf %18, %19 : vector<256x128xf32>
      %21 = math.sqrt %20 : vector<256x128xf32>
      %c0_20 = arith.constant 0 : index
      %c0_21 = arith.constant 0 : index
      %22 = vector.load %arg8[%c0_20, %c0_21] : memref<256x128xf32, #tpu.memory_space<vmem>>, vector<256x128xf32>
      %c0_22 = arith.constant 0 : index
      %c0_23 = arith.constant 0 : index
      %23 = vector.load %arg5[%c0_22, %c0_23] : memref<1x128xf32, #tpu.memory_space<vmem>>, vector<1x128xf32>
      %24 = vector.broadcast %23 : vector<1x128xf32> to vector<256x128xf32>
      %25 = arith.addf %22, %24 : vector<256x128xf32>
      %c0_24 = arith.constant 0 : index
      %c0_25 = arith.constant 0 : index
      %26 = vector.load %arg6[%c0_24, %c0_25] : memref<256x128xf32, #tpu.memory_space<vmem>>, vector<256x128xf32>
      %27 = arith.mulf %26, %21 : vector<256x128xf32>
      %28 = arith.addf %25, %27 : vector<256x128xf32>
      %c0_26 = arith.constant 0 : index
      %c0_27 = arith.constant 0 : index
      %29 = vector.load %arg7[%c0_26, %c0_27] : memref<256x128xf32, #tpu.memory_space<vmem>>, vector<256x128xf32>
      tpu.vector_store %arg7[%c0_26, %c0_27], %28 {strides = array<i32>} : memref<256x128xf32, #tpu.memory_space<vmem>>, vector<256x128xf32>,
    } else {
    }
    return
  }
  func.func @transform_0(%arg0: i32, %arg1: i32) -> (i32, i32) {
    %c0_i32 = arith.constant 0 : i32
    return %arg0, %arg1 : i32, i32
  }
  func.func @transform_1(%arg0: i32, %arg1: i32) -> (i32, i32) {
    %c0_i32 = arith.constant 0 : i32
    %c0_i32_0 = arith.constant 0 : i32
    return %arg1, %c0_i32 : i32, i32
  }
  func.func @transform_2(%arg0: i32, %arg1: i32) -> (i32, i32) {
    %c0_i32 = arith.constant 0 : i32
    %c0_i32_0 = arith.constant 0 : i32
    return %arg1, %c0_i32 : i32, i32
  }
  func.func @transform_3(%arg0: i32, %arg1: i32) -> (i32, i32) {
    %c0_i32 = arith.constant 0 : i32
    %c0_i32_0 = arith.constant 0 : i32
    %c0_i32_1 = arith.constant 0 : i32
    return %c0_i32, %c0_i32_0 : i32, i32
  }
  func.func @transform_4(%arg0: i32, %arg1: i32) -> (i32, i32) {
    %c0_i32 = arith.constant 0 : i32
    %c0_i32_0 = arith.constant 0 : i32
    return %arg0, %c0_i32 : i32, i32
  }
  func.func @transform_5(%arg0: i32, %arg1: i32) -> (i32, i32) {
    %c0_i32 = arith.constant 0 : i32
    %c0_i32_0 = arith.constant 0 : i32
    return %arg0, %c0_i32 : i32, i32
  }
}

</mosaic_0001>

<bundles_post_ra>
// kernel: tpu_custom_call.1
= control target key start
LH: loop header
LB: loop body
LE: loop exit
PB: predicated region body
PF: predicated region fallthrough
CT: control target
= control target key end

     0   :  { %10 = vsyncpa [#allocation5], 0  ;;  %s3181_s0 = inlined_call_operand.vmem [shape: f32[512,36], index: 0, kind: input, shape index: {}]   ;;  %s3182_s1 = inlined_call_operand.vmem [shape: f32[36,128], index: 1, kind: input, shape index: {}]   ;;  %s3183_s2 = inlined_call_operand.vmem [shape: f32[36,128], index: 2, kind: input, shape index: {}]   ;;  %s3184_s3 = inlined_call_operand.vmem [shape: f32[1,128], index: 3, kind: input, shape index: {}]   ;;  %s3185_s4 = inlined_call_operand.vmem [shape: f32[512,128], index: 4, kind: input, shape index: {}]   ;;  %s3186_s5 = inlined_call_operand.hbm [shape: f32[512,128], index: 5, kind: output, shape index: {}]  }
   0x1   :  { %12 = vsyncpa [#allocation5 + $0x1], 0  ;;  %s2425_s18 = smov 0   ;;  %s2427_s19 = smov 0  }
   0x2   :  { %s2429_s20 = smov 0   ;;  %s2431_s21 = smov 0  }
   0x3   :  { %s2433_s22 = smov 0   ;;  %s2435_s23 = smov 0  }
   0x4 LB: > { %s1918_s24 = sadd.s32 4294967295, %s2390_s23   ;;  %s1919_s25 = sadd.s32 4294967294, %s2390_s23   ;;  %s2390_s23 = sphi %s2435_s23, %s18_s23   ;;  %s2386_s22 = sphi %s2433_s22, %s3193_s22   ;;  %s2382_s21 = sphi %s2431_s21, %s3192_s21   ;;  %s2378_s20 = sphi %s2429_s20, %s3191_s20   ;;  %s2374_s19 = sphi %s2427_s19, %s3190_s19   ;;  %s2370_s18 = sphi %s2425_s18, %s3189_s18  }
   0x5   : > { %s30_s26 = sadd.s32 1, %s2386_s22  ;;  %s164_s27 = sadd.s32 1, %s2378_s20 }
   0x6   : > { %p32_p0 = scmp.ge.s32.totalorder %s30_s26, 2  ;;  %p174_p1 = scmp.ne.s32.totalorder %s2378_s20, %s2374_s19 }
   0x7   : > { %p175_p2 = scmp.eq.s32.totalorder %s1918_s24, 1  ;;  %p180_p3 = scmp.ne.s32.totalorder %s2374_s19, %s2370_s18 }
   0x8   : > { %s3195_s26 = smov (%p32_p0, %s30_s26), 0  ;;  %p181_p5 = scmp.eq.s32.totalorder %s1919_s25, 1 }
   0x9   : > { %p2465_p4 = por %p175_p2, %p174_p1  ;;  %s161_s29 = ssub.s32 %s2386_s22, %s3195_s26 }
   0xa   : > { %p1924_p6 = scmp.ge.s32.totalorder %s2390_s23, 1  ;;  %p162_p7 = scmp.eq.s32.totalorder %s161_s29, 0 }
   0xb   : > { %p2472_p8 = por %p181_p5, %p180_p3  ;;  %p241_p9 = scmp.lt.s32.totalorder %s2390_s23, 3 }
   0xc   : > { %s2478_s6 = scalar_select %p162_p7, %s2378_s20, %s164_s27  }
   0xd   : > { %p242_p10 = pnand %p1924_p6, %p241_p9 }
   0xe   : > { %s1926_s11 = sshll.u32 (!%p242_p10), %s2382_s21, 5  ;;  %s284_s9 = sand.u32 (!%p242_p10), 1, %s2374_s19  }
   0xf   : > { %245 = sbr.rel (%p242_p10) target bundleno = 336 (0x150), region = 40  ;;  %p288_p11 = scmp.lt.s32.totalorder (!%p242_p10), %s1926_s11, 63 }
  0x10   : > { %s2002_s10 = sshll.u32 (!%p242_p10), %s2382_s21, 12  ;;  %s3136_s21 = scalar_lea.sflag (!%p242_p10), [#allocation5], %s284_s9 }
  0x11   : > { %s2392_s17 = smov (!%p242_p10), [#allocation4]  }
  0x12   : > { %s2318_s24 = sshll.u32 (!%p242_p10), %s2392_s17, 4  ;;  %s2319_s24 = int_to_ptr.vmem [resolvable:$false] %s2318_s24 }
  0x13   : > { %s2320_s25 = scalar_lea.vmem (!%p242_p10), %s2319_s24, 8192 }
  0x14   : > { %vm549_vm0 = vcmask 1043456   ;;  %v910_v0 = vld [vmem:[%s3183_s2 + $0x20] sm:$0xf]  ;;  %v909_v1 = vld [vmem:[%s3183_s2 + $0x18] sm:$0xff]  ;;  %v908_v3 = vld [vmem:[%s3183_s2 + $0x10] sm:$0xff]  ;;  %s3197_s11 = smov (!%p288_p11, %s1926_s11), 63 }
  0x15   : > { %2135 = vmatprep.subr.msk.mxu1 %vm549_vm0, %v910_v0  ;;  %v451_v2 = vld [vmem:[%s3182_s1 + $0x20] sm:$0xf]  ;;  %v450_v4 = vld [vmem:[%s3182_s1 + $0x18] sm:$0xff]  ;;  %v449_v5 = vld [vmem:[%s3182_s1 + $0x10] sm:$0xff]  ;;  %s1927_s7 = sshll.u32 %s3197_s11, 3  ;;  %vm452_vm1 = vcmask 293888  }
  0x16   : > { %2136 = vmatpush3.msk.msra.mxu1 %vm549_vm0, %v910_v0  ;;  %2077 = vmatprep.subr.msk.mxu0 %vm549_vm0, %v451_v2  ;;  %v907_v6 = vld [vmem:[%s3183_s2 + $0x8] sm:$0xff]  ;;  %v906_v8 = vld [vmem:[%s3183_s2] sm:$0xff]  ;;  %s2516_s15 = scalar_lea.vmem %s3181_s0, %s1927_s7  ;;  %s2653_s8 = scalar_lea.vmem %s3185_s4, %s1927_s7 }
  0x17   : > { %2137 = vmatprep.subr.mxu1 %v909_v1  ;;  %2078 = vmatpush3.msk.msra.mxu0 %vm549_vm0, %v451_v2  ;;  %v448_v7 = vld [vmem:[%s3182_s1 + $0x8] sm:$0xff]  ;;  %v383_v9 = vld [vmem:[%s2516_s15] sm:$0xff]  ;;  %v385_v11 = vld [vmem:[%s2516_s15 + $0x10] sm:$0xff]  ;;  %s2688_s11 = sshll.u32 %s284_s9, 8 }
  0x18   : > { %2138 = vmatpush3.msra.mxu1 %v909_v1  ;;  %2079 = vmatprep.subr.mxu0 %v450_v4  ;;  %v384_v10 = vld [vmem:[%s2516_s15 + $0x8] sm:$0xff]  ;;  %v874_v12 = vmul.f32 %v383_v9, %v383_v9  ;;  %v876_v14 = vmul.f32 %v385_v11, %v385_v11  ;;  %v386_v15 = vld [vmem:[%s2516_s15 + $0x18] sm:$0xff]  ;;  %v447_v16 = vld [vmem:[%s3182_s1] sm:$0xff]  ;;  %s2741_s7 = scalar_lea.vmem [#allocation4], %s2688_s11 }
  0x19   : > { %2139 = vmatprep.subr.mxu1 %v908_v3  ;;  %2080 = vmatpush3.msra.mxu0 %v450_v4  ;;  %v875_v13 = vmul.f32 %v384_v10, %v384_v10  ;;  %v387_v17 = vld [vmem:[%s2516_s15 + $0x20] sm:$0xff]  ;;  %v877_v18 = vmul.f32 %v386_v15, %v386_v15  ;;  %v388_v20 = vld [vmem:[%s2516_s15 + $0x28] sm:$0xff]  ;;  %v389_v21 = vld [vmem:[%s2516_s15 + $0x30] sm:$0xff]  ;;  %s1803_s12 = sshll.u32 %s2741_s7, 4  ;;  %s3130_s12 = int_to_ptr.vmem [resolvable:$true] %s1803_s12 }
  0x1a   : > { %2140 = vmatpush3.msra.mxu1 %v908_v3  ;;  %2081 = vmatprep.subr.mxu0 %v449_v5  ;;  %v878_v19 = vmul.f32 %v387_v17, %v387_v17  ;;  %v879_v22 = vmul.f32 %v388_v20, %v388_v20  ;;  %v880_v23 = vmul.f32 %v389_v21, %v389_v21  ;;  %v390_v24 = vld [vmem:[%s2516_s15 + $0x38] sm:$0xff]  ;;  %v391_v25 = vld [vmem:[%s2516_s15 + $0x40] sm:$0xff]  ;;  %v392_v28 = vld [vmem:[%s2516_s15 + $0x48] sm:$0xff]  ;;  %s2314_s16 = scalar_lea.vmem %s3130_s12, 4096  ;;  %p2321_p1 = scmp.lt.s32.totalorder %s3130_s12, %s2319_s24 }
  0x1b   : > { %2141 = vmatprep.subr.mxu1 %v907_v6  ;;  %2082 = vmatpush3.msra.mxu0 %v449_v5  ;;  %v881_v26 = vmul.f32 %v390_v24, %v390_v24  ;;  %v882_v27 = vmul.f32 %v391_v25, %v391_v25  ;;  %v393_v29 = vld [vmem:[%s2516_s15 + $0x50] sm:$0xff]  ;;  %v883_v30 = vmul.f32 %v392_v28, %v392_v28  ;;  %v394_v32 = vld [vmem:[%s2516_s15 + $0x58] sm:$0xff]  ;;  %v395_v33 = vld [vmem:[%s2516_s15 + $0x60] sm:$0xff]  ;;  %p2315_p12 = scmp.ne.s32.totalorder %s3130_s12, %s2314_s16  ;;  %p2322_p2 = scmp.lt.s32.totalorder %s2320_s25, %s2314_s16 }
  0x1c   : > { %2142 = vmatpush3.msra.mxu1 %v907_v6  ;;  %2083 = vmatprep.subr.mxu0 %v448_v7  ;;  %v884_v31 = vmul.f32 %v393_v29, %v393_v29  ;;  %v885_v34 = vmul.f32 %v394_v32, %v394_v32  ;;  %v886_v35 = vmul.f32 %v395_v33, %v395_v33  ;;  %v396_v36 = vld [vmem:[%s2516_s15 + $0x68] sm:$0xff]  ;;  %v397_v37 = vld [vmem:[%s2516_s15 + $0x70] sm:$0xff]  ;;  %v398_v40 = vld [vmem:[%s2516_s15 + $0x78] sm:$0xff] }
  0x1d   : > { %2143 = vmatprep.subr.mxu1 %v906_v8  ;;  %2084 = vmatpush3.msra.mxu0 %v448_v7  ;;  %v887_v38 = vmul.f32 %v396_v36, %v396_v36  ;;  %v888_v39 = vmul.f32 %v397_v37, %v397_v37  ;;  %v399_v41 = vld [vmem:[%s2516_s15 + $0x80] sm:$0xff]  ;;  %v889_v42 = vmul.f32 %v398_v40, %v398_v40  ;;  %v400_v44 = vld [vmem:[%s2516_s15 + $0x88] sm:$0xff]  ;;  %v401_v45 = vld [vmem:[%s2516_s15 + $0x90] sm:$0xff]  ;;  %p2316_p13 = pnand %p2315_p12, %p2465_p4  ;;  %p2323_p3 = por %p2322_p2, %p2321_p1 }
  0x1e   : > { %2144 = vmatpush3.msra.mxu1 %v906_v8  ;;  %2145 = vmatprep.mubr.msk.f32.mxu1 %vm452_vm1, %v874_v12  ;;  %v890_v43 = vmul.f32 %v399_v41, %v399_v41  ;;  %v891_v46 = vmul.f32 %v400_v44, %v400_v44  ;;  %v892_v47 = vmul.f32 %v401_v45, %v401_v45  ;;  %v402_v48 = vld [vmem:[%s2516_s15 + $0x98] sm:$0xff]  ;;  %v403_v49 = vld [vmem:[%s2516_s15 + $0xa0] sm:$0xff]  ;;  %v404_v52 = vld [vmem:[%s2516_s15 + $0xa8] sm:$0xff] }
  0x1f   : > { %2146 = vmatmul.mubr.msk.f32.vlgmr.msra.gmra.mxu1 %vm452_vm1, %v875_v13  ;;  %2085 = vmatprep.subr.mxu0 %v447_v16  ;;  %v893_v50 = vmul.f32 %v402_v48, %v402_v48  ;;  %v894_v51 = vmul.f32 %v403_v49, %v403_v49  ;;  %v405_v53 = vld [vmem:[%s2516_s15 + $0xb0] sm:$0xff]  ;;  %v895_v54 = vmul.f32 %v404_v52, %v404_v52  ;;  %v406_v56 = vld [vmem:[%s2516_s15 + $0xb8] sm:$0xff]  ;;  %v407_v57 = vld [vmem:[%s2516_s15 + $0xc0] sm:$0xff]  ;;  %p2317_p0 = pneg %p2316_p13 }
  0x20   : > { %2148 = vmatprep.mubr.msk.f32.mxu1 %vm452_vm1, %v876_v14  ;;  %2086 = vmatpush3.msra.mxu0 %v447_v16  ;;  %v896_v55 = vmul.f32 %v405_v53, %v405_v53  ;;  %v897_v58 = vmul.f32 %v406_v56, %v406_v56  ;;  %v898_v59 = vmul.f32 %v407_v57, %v407_v57  ;;  %v408_v60 = vld [vmem:[%s2516_s15 + $0xc8] sm:$0xff]  ;;  %v409_v61 = vld [vmem:[%s2516_s15 + $0xd0] sm:$0xff]  ;;  %v410_v0 = vld [vmem:[%s2516_s15 + $0xd8] sm:$0xff] }
  0x21   : > { %2087 = vmatprep.mubr.msk.f32.mxu0 %vm452_vm1, %v383_v9  ;;  %v899_v62 = vmul.f32 %v408_v60, %v408_v60  ;;  %v900_v63 = vmul.f32 %v409_v61, %v409_v61  ;;  %v411_v1 = vld [vmem:[%s2516_s15 + $0xe0] sm:$0xff]  ;;  %v901_v2 = vmul.f32 %v410_v0, %v410_v0  ;;  %v412_v4 = vld [vmem:[%s2516_s15 + $0xe8] sm:$0xff]  ;;  %v413_v5 = vld [vmem:[%s2516_s15 + $0xf0] sm:$0xff]  ;;  %p2324_p5 = pnand %p2323_p3, %p2317_p0 }
  0x22   : > { %2088 = vmatmul.mubr.msk.f32.vlgmr.msra.gmra.mxu0 %vm452_vm1, %v384_v10  ;;  %v902_v3 = vmul.f32 %v411_v1, %v411_v1  ;;  %v903_v6 = vmul.f32 %v412_v4, %v412_v4  ;;  %v904_v7 = vmul.f32 %v413_v5, %v413_v5  ;;  %v414_v8 = vld [vmem:[%s2516_s15 + $0xf8] sm:$0xff]  ;;  %s3128_s15 = scalar_lea.hbm %s3186_s5, %s2002_s10 }
  0x23   : > { %2149 = vmatmul.mubr.msk.f32.gmra.mxu1 %vm452_vm1, %v877_v18  ;;  %2090 = vmatprep.mubr.msk.f32.mxu0 %vm452_vm1, %v385_v11  ;;  %v905_v9 = vmul.f32 %v414_v8, %v414_v8 }
  0x24   : > { %2151 = vmatprep.mubr.msk.f32.mxu1 %vm452_vm1, %v878_v19 }
  0x26   : > { %2091 = vmatmul.mubr.msk.f32.gmra.mxu0 %vm452_vm1, %v386_v15 }
  0x27   : > { %2152 = vmatmul.mubr.msk.f32.gmra.mxu1 %vm452_vm1, %v879_v22  ;;  %2093 = vmatprep.mubr.msk.f32.mxu0 %vm452_vm1, %v387_v17 }
  0x28   : > { %2154 = vmatprep.mubr.msk.f32.mxu1 %vm452_vm1, %v880_v23 }
  0x2a   : > { %2094 = vmatmul.mubr.msk.f32.gmra.mxu0 %vm452_vm1, %v388_v20 }
  0x2b   : > { %2155 = vmatmul.mubr.msk.f32.gmra.mxu1 %vm452_vm1, %v881_v26  ;;  %2096 = vmatprep.mubr.msk.f32.mxu0 %vm452_vm1, %v389_v21  ;;  %v2637_v26 = vld [vmem:[%s3184_s3] ss:$0 sm:$0xff] }
  0x2c   : > { %2157 = vmatprep.mubr.msk.f32.mxu1 %vm452_vm1, %v882_v27 }
  0x2e   : > { %2097 = vmatmul.mubr.msk.f32.gmra.mxu0 %vm452_vm1, %v390_v24 }
  0x2f   : > { %2158 = vmatmul.mubr.msk.f32.gmra.mxu1 %vm452_vm1, %v883_v30  ;;  %2099 = vmatprep.mubr.msk.f32.mxu0 %vm452_vm1, %v391_v25 }
  0x30   : > { %2160 = vmatprep.mubr.msk.f32.mxu1 %vm452_vm1, %v884_v31 }
  0x32   : > { %2100 = vmatmul.mubr.msk.f32.gmra.mxu0 %vm452_vm1, %v392_v28 }
  0x33   : > { %2161 = vmatmul.mubr.msk.f32.gmra.mxu1 %vm452_vm1, %v885_v34  ;;  %2102 = vmatprep.mubr.msk.f32.mxu0 %vm452_vm1, %v393_v29 }
  0x34   : > { %2163 = vmatprep.mubr.msk.f32.mxu1 %vm452_vm1, %v886_v35 }
  0x36   : > { %2103 = vmatmul.mubr.msk.f32.gmra.mxu0 %vm452_vm1, %v394_v32 }
  0x37   : > { %2164 = vmatmul.mubr.msk.f32.gmra.mxu1 %vm452_vm1, %v887_v38  ;;  %2105 = vmatprep.mubr.msk.f32.mxu0 %vm452_vm1, %v395_v33 }
  0x38   : > { %2166 = vmatprep.mubr.msk.f32.mxu1 %vm452_vm1, %v888_v39 }
  0x3a   : > { %2106 = vmatmul.mubr.msk.f32.gmra.mxu0 %vm452_vm1, %v396_v36 }
  0x3b   : > { %2167 = vmatmul.mubr.msk.f32.gmra.mxu1 %vm452_vm1, %v889_v42  ;;  %2108 = vmatprep.mubr.msk.f32.mxu0 %vm452_vm1, %v397_v37 }
  0x3c   : > { %2169 = vmatprep.mubr.msk.f32.mxu1 %vm452_vm1, %v890_v43 }
  0x3e   : > { %2109 = vmatmul.mubr.msk.f32.gmra.mxu0 %vm452_vm1, %v398_v40 }
  0x3f   : > { %2170 = vmatmul.mubr.msk.f32.gmra.mxu1 %vm452_vm1, %v891_v46  ;;  %2111 = vmatprep.mubr.msk.f32.mxu0 %vm452_vm1, %v399_v41 }
  0x40   : > { %2172 = vmatprep.mubr.msk.f32.mxu1 %vm452_vm1, %v892_v47  ;;  %v1662_v47 = vld [vmem:[%s2653_s8 + $0x8] sm:$0xff] }
  0x42   : > { %2112 = vmatmul.mubr.msk.f32.gmra.mxu0 %vm452_vm1, %v400_v44 }
  0x43   : > { %2173 = vmatmul.mubr.msk.f32.gmra.mxu1 %vm452_vm1, %v893_v50  ;;  %2114 = vmatprep.mubr.msk.f32.mxu0 %vm452_vm1, %v401_v45 }
  0x44   : > { %2175 = vmatprep.mubr.msk.f32.mxu1 %vm452_vm1, %v894_v51 }
  0x46   : > { %2115 = vmatmul.mubr.msk.f32.gmra.mxu0 %vm452_vm1, %v402_v48 }
  0x47   : > { %2176 = vmatmul.mubr.msk.f32.gmra.mxu1 %vm452_vm1, %v895_v54  ;;  %2117 = vmatprep.mubr.msk.f32.mxu0 %vm452_vm1, %v403_v49 }
  0x48   : > { %2178 = vmatprep.mubr.msk.f32.mxu1 %vm452_vm1, %v896_v55 }
  0x4a   : > { %2118 = vmatmul.mubr.msk.f32.gmra.mxu0 %vm452_vm1, %v404_v52 }
  0x4b   : > { %2179 = vmatmul.mubr.msk.f32.gmra.mxu1 %vm452_vm1, %v897_v58  ;;  %2120 = vmatprep.mubr.msk.f32.mxu0 %vm452_vm1, %v405_v53 }
  0x4c   : > { %2181 = vmatprep.mubr.msk.f32.mxu1 %vm452_vm1, %v898_v59  ;;  %v1661_v59 = vld [vmem:[%s2653_s8] sm:$0xff] }
  0x4e   : > { %2121 = vmatmul.mubr.msk.f32.gmra.mxu0 %vm452_vm1, %v406_v56 }
  0x4f   : > { %2182 = vmatmul.mubr.msk.f32.gmra.mxu1 %vm452_vm1, %v899_v62  ;;  %2123 = vmatprep.mubr.msk.f32.mxu0 %vm452_vm1, %v407_v57 }
  0x50   : > { %2184 = vmatprep.mubr.msk.f32.mxu1 %vm452_vm1, %v900_v63 }
  0x52   : > { %2124 = vmatmul.mubr.msk.f32.gmra.mxu0 %vm452_vm1, %v408_v60 }
  0x53   : > { %2185 = vmatmul.mubr.msk.f32.gmra.mxu1 %vm452_vm1, %v901_v2  ;;  %2126 = vmatprep.mubr.msk.f32.mxu0 %vm452_vm1, %v409_v61 }
  0x54   : > { %2187 = vmatprep.mubr.msk.f32.mxu1 %vm452_vm1, %v902_v3 }
  0x56   : > { %2127 = vmatmul.mubr.msk.f32.gmra.mxu0 %vm452_vm1, %v410_v0 }
  0x57   : > { %2188 = vmatmul.mubr.msk.f32.gmra.mxu1 %vm452_vm1, %v903_v6  ;;  %2129 = vmatprep.mubr.msk.f32.mxu0 %vm452_vm1, %v411_v1 }
  0x58   : > { %2190 = vmatprep.mubr.msk.f32.mxu1 %vm452_vm1, %v904_v7 }
  0x5a   : > { %2130 = vmatmul.mubr.msk.f32.gmra.mxu0 %vm452_vm1, %v412_v4 }
  0x5b   : > { %2191 = vmatmul.mubr.msk.f32.gmra.mxu1 %vm452_vm1, %v905_v9  ;;  %2132 = vmatprep.mubr.msk.f32.mxu0 %vm452_vm1, %v413_v5 }
  0x5e   : > { %2133 = vmatmul.mubr.msk.f32.gmra.mxu0 %vm452_vm1, %v414_v8 }
  0xdf   : > { %v2147_v10 = vpop.f32.mrf.mxu1 }
  0xe0   : > { %v2617_v11 = vmax.f32 %v2147_v10, 1e-08 }
  0xe1   : > { %v1076_v12 = vpop.f32.mrf.mxu1 }
  0xe2   : > { %2250 = vrsqrt.f32 %v2617_v11  ;;  %v2620_v13 = vmax.f32 %v1076_v12, 1e-08  ;;  %v2089_v14 = vpop.f32.mrf.mxu0  ;;  %vm1375_vm2 = vcmp.eq.f32.partialorder %v2617_v11, inf  ;;  %vm1377_vm3 = vcmp.eq.f32.partialorder %v2617_v11, 0.0  ;;  %v1664_v12 = vld [vmem:[%s2653_s8 + $0x18] sm:$0xff] }
  0xe3   : > { %v2150_v15 = vpop.f32.mrf.mxu1  ;;  %v1378_v32 = vand.u32 2147483648, %v2617_v11  ;;  %v1630_v33 = vadd.f32 %v2089_v14, %v2637_v26 }
  0xe4   : > { %2252 = vrsqrt.f32 %v2620_v13  ;;  %v2623_v16 = vmax.f32 %v2150_v15, 1e-08  ;;  %v619_v17 = vpop.f32.mrf.mxu0  ;;  %vm1368_vm4 = vcmp.eq.f32.partialorder %v2620_v13, inf  ;;  %vm1370_vm5 = vcmp.eq.f32.partialorder %v2620_v13, 0.0 }
  0xe5   : > { %v1086_v18 = vpop.f32.mrf.mxu1  ;;  %v1371_v35 = vand.u32 2147483648, %v2620_v13  ;;  %v2660_v36 = vadd.f32 %v2637_v26, %v619_v17 }
  0xe6   : > { %2254 = vrsqrt.f32 %v2623_v16  ;;  %v2626_v19 = vmax.f32 %v1086_v18, 1e-08  ;;  %v2092_v20 = vpop.f32.mrf.mxu0  ;;  %vm1389_vm6 = vcmp.eq.f32.partialorder %v2623_v16, inf  ;;  %vm1391_vm7 = vcmp.eq.f32.partialorder %v2623_v16, 0.0 }
  0xe7   : > { %v2153_v21 = vpop.f32.mrf.mxu1  ;;  %v1392_v40 = vand.u32 2147483648, %v2623_v16  ;;  %v2667_v41 = vadd.f32 %v2092_v20, %v2637_v26 }
  0xe8   : > { %2256 = vrsqrt.f32 %v2626_v19  ;;  %v2629_v22 = vmax.f32 %v2153_v21, 1e-08  ;;  %v629_v23 = vpop.f32.mrf.mxu0  ;;  %vm1382_vm8 = vcmp.eq.f32.partialorder %v2626_v19, inf  ;;  %v1385_v44 = vand.u32 2147483648, %v2626_v19 }
  0xe9   : > { %v1096_v24 = vpop.f32.mrf.mxu1  ;;  %vm1384_vm9 = vcmp.eq.f32.partialorder %v2626_v19, 0.0  ;;  %v2678_v49 = vadd.f32 %v2637_v26, %v629_v23 }
  0xea   : > { %2258 = vrsqrt.f32 %v2629_v22  ;;  %v2632_v25 = vmax.f32 %v1096_v24, 1e-08  ;;  %v2095_v27 = vpop.f32.mrf.mxu0  ;;  %v1406_v50 = vand.u32 2147483648, %v2629_v22  ;;  %vm1403_vm10 = vcmp.eq.f32.partialorder %v2629_v22, inf }
  0xeb   : > { %v2156_v28 = vpop.f32.mrf.mxu1  ;;  %v2682_v51 = vadd.f32 %v2095_v27, %v2637_v26  ;;  %vm1405_vm11 = vcmp.eq.f32.partialorder %v2629_v22, 0.0 }
  0xec   : > { %2260 = vrsqrt.f32 %v2632_v25  ;;  %v2640_v29 = vmax.f32 %v2156_v28, 1e-08  ;;  %v639_v30 = vpop.f32.mrf.mxu0  ;;  %v1399_v52 = vand.u32 2147483648, %v2632_v25  ;;  %vm1396_vm12 = vcmp.eq.f32.partialorder %v2632_v25, inf  ;;  %v1663_v28 = vld [vmem:[%s2653_s8 + $0x10] sm:$0xff] }
  0xed   : > { %v1106_v31 = vpop.f32.mrf.mxu1  ;;  %v2703_v61 = vadd.f32 %v2637_v26, %v639_v30  ;;  %vm1398_vm13 = vcmp.eq.f32.partialorder %v2632_v25, 0.0 }
  0xee   : > { %2262 = vrsqrt.f32 %v2640_v29  ;;  %v2656_v34 = vmax.f32 %v1106_v31, 1e-08  ;;  %v2098_v37 = vpop.f32.mrf.mxu0  ;;  %v1420_v62 = vand.u32 2147483648, %v2640_v29  ;;  %vm1417_vm14 = vcmp.eq.f32.partialorder %v2640_v29, inf }
  0xef   : > { %v2251_v38 = vpop.eup %2250  ;;  %v2159_v39 = vpop.f32.mrf.mxu1  ;;  %v2707_v63 = vadd.f32 %v2098_v37, %v2637_v26  ;;  %vm1419_vm15 = vcmp.eq.f32.partialorder %v2640_v29, 0.0 }
  0xf0   : > { %2264 = vrsqrt.f32 %v2656_v34  ;;  %v2670_v42 = vmax.f32 %v2159_v39, 1e-08  ;;  %v1374_v43 = vmul.f32 %v2251_v38, %v2617_v11  ;;  %v649_v45 = vpop.f32.mrf.mxu0  ;;  %v1413_v8 = vand.u32 2147483648, %v2656_v34  ;;  %v1666_v39 = vld [vmem:[%s2653_s8 + $0x28] sm:$0xff] }
  0xf1   : > { %v2253_v46 = vpop.eup %2252  ;;  %v1116_v48 = vpop.f32.mrf.mxu1  ;;  %v2721_v9 = vadd.f32 %v2637_v26, %v649_v45  ;;  %vm1410_vm0 = vcmp.eq.f32.partialorder %v2656_v34, inf  ;;  %vm1412_vm1 = vcmp.eq.f32.partialorder %v2656_v34, 0.0 }
  0xf2   : > { %2266 = vrsqrt.f32 %v2670_v42  ;;  %v1376_v53 = vsel %vm1375_vm2, %v2617_v11, %v1374_v43  ;;  %v2693_v54 = vmax.f32 %v1116_v48, 1e-08  ;;  %v1367_v55 = vmul.f32 %v2253_v46, %v2620_v13  ;;  %v2101_v56 = vpop.f32.mrf.mxu0 }
  0xf3   : > { %v2255_v57 = vpop.eup %2254  ;;  %v1379_v58 = vsel %vm1377_vm3, %v1378_v32, %v1376_v53  ;;  %v2162_v60 = vpop.f32.mrf.mxu1  ;;  %v1434_v21 = vand.u32 2147483648, %v2670_v42  ;;  %v2738_v23 = vadd.f32 %v2101_v56, %v2637_v26  ;;  %vm1431_vm2 = vcmp.eq.f32.partialorder %v2670_v42, inf }
  0xf4   : > { %v1694_v0 = vmul.f32 %v1662_v47, %v1379_v58  ;;  %2268 = vrsqrt.f32 %v2693_v54  ;;  %v1369_v1 = vsel %vm1368_vm4, %v2620_v13, %v1367_v55  ;;  %v2713_v2 = vmax.f32 %v2162_v60, 1e-08  ;;  %v659_v3 = vpop.f32.mrf.mxu0 }
  0xf5   : > { %v2257_v4 = vpop.eup %2256  ;;  %v1372_v5 = vsel %vm1370_vm5, %v1371_v35, %v1369_v1  ;;  %v1388_v6 = vmul.f32 %v2255_v57, %v2623_v16  ;;  %v1126_v7 = vpop.f32.mrf.mxu1  ;;  %v1427_v37 = vand.u32 2147483648, %v2693_v54  ;;  %vm1433_vm3 = vcmp.eq.f32.partialorder %v2670_v42, 0.0 }
  0xf6   : > { %v1726_v10 = vadd.f32 %v1694_v0, %v1630_v33  ;;  %v1693_v11 = vmul.f32 %v1661_v59, %v1372_v5  ;;  %2270 = vrsqrt.f32 %v2713_v2  ;;  %v2725_v14 = vmax.f32 %v1126_v7, 1e-08  ;;  %v2728_v13 = vpop.f32.mrf.mxu0 }
  0xf7   : > { %v2259_v15 = vpop.eup %2258  ;;  %v1390_v17 = vsel %vm1389_vm6, %v2623_v16, %v1388_v6  ;;  %v1381_v18 = vmul.f32 %v2257_v4, %v2626_v19  ;;  %v2165_v20 = vpop.f32.mrf.mxu1  ;;  %vm1424_vm4 = vcmp.eq.f32.partialorder %v2693_v54, inf  ;;  %v2782_v55 = vadd.f32 %v2637_v26, %v659_v3  ;;  %v1668_v4 = vld [vmem:[%s2653_s8 + $0x38] sm:$0xff] }
  0xf8   : > { %1758 = vst [vmem:[%s2741_s7 + $0x8] sm:$0xff] %v1726_v10  ;;  %v1725_v24 = vadd.f32 %v1693_v11, %v2660_v36  ;;  %v1393_v27 = vsel %vm1391_vm7, %v1392_v40, %v1390_v17  ;;  %2272 = vrsqrt.f32 %v2725_v14  ;;  %v2751_v30 = vmax.f32 %v2165_v20, 1e-08  ;;  %v2754_v31 = vpop.f32.mrf.mxu0  ;;  %v1667_v10 = vld [vmem:[%s2653_s8 + $0x30] sm:$0xff] }
  0xf9   : > { %v2261_v32 = vpop.eup %2260  ;;  %v1696_v33 = vmul.f32 %v1664_v12, %v1393_v27  ;;  %v1383_v35 = vsel %vm1382_vm8, %v2626_v19, %v1381_v18  ;;  %v1402_v16 = vmul.f32 %v2259_v15, %v2629_v22  ;;  %v1136_v36 = vpop.f32.mrf.mxu1  ;;  %vm1426_vm5 = vcmp.eq.f32.partialorder %v2693_v54, 0.0 }
  0xfa   : > { %1757 = vst [vmem:[%s2741_s7] sm:$0xff] %v1725_v24  ;;  %v1386_v38 = vsel %vm1384_vm9, %v1385_v44, %v1383_v35  ;;  %2274 = vrsqrt.f32 %v2751_v30  ;;  %v2768_v40 = vmax.f32 %v1136_v36, 1e-08  ;;  %v1395_v43 = vmul.f32 %v2261_v32, %v2632_v25  ;;  %v2772_v45 = vpop.f32.mrf.mxu0  ;;  %v1665_v44 = vld [vmem:[%s2653_s8 + $0x20] sm:$0xff]  ;;  %v1670_v32 = vld [vmem:[%s2653_s8 + $0x48] sm:$0xff] }
  0xfb   : > { %v2263_v46 = vpop.eup %2262  ;;  %v1728_v47 = vadd.f32 %v1696_v33, %v2667_v41  ;;  %v1695_v48 = vmul.f32 %v1663_v28, %v1386_v38  ;;  %v1404_v19 = vsel %vm1403_vm10, %v2629_v22, %v1402_v16  ;;  %v2168_v53 = vpop.f32.mrf.mxu1  ;;  %vm1445_vm6 = vcmp.eq.f32.partialorder %v2713_v2, inf }
  0xfc   : > { %v1407_v41 = vsel %vm1405_vm11, %v1406_v50, %v1404_v19  ;;  %2276 = vrsqrt.f32 %v2768_v40  ;;  %v1397_v56 = vsel %vm1396_vm12, %v2632_v25, %v1395_v43  ;;  %v2792_v57 = vmax.f32 %v2168_v53, 1e-08  ;;  %v2795_v58 = vpop.f32.mrf.mxu0 }
  0xfd   : > { %v2265_v59 = vpop.eup %2264  ;;  %1760 = vst [vmem:[%s2741_s7 + $0x18] sm:$0xff] %v1728_v47  ;;  %v1727_v60 = vadd.f32 %v1695_v48, %v2678_v49  ;;  %v1698_v22 = vmul.f32 %v1666_v39, %v1407_v41  ;;  %v1400_v50 = vsel %vm1398_vm13, %v1399_v52, %v1397_v56  ;;  %v1416_v0 = vmul.f32 %v2263_v46, %v2640_v29  ;;  %v1146_v1 = vpop.f32.mrf.mxu1  ;;  %v1669_v39 = vld [vmem:[%s2653_s8 + $0x40] sm:$0xff]  ;;  %v1672_v41 = vld [vmem:[%s2653_s8 + $0x58] sm:$0xff] }
  0xfe   : > { %v1697_v3 = vmul.f32 %v1665_v44, %v1400_v50  ;;  %2278 = vrsqrt.f32 %v2792_v57  ;;  %v2806_v5 = vmax.f32 %v1146_v1, 1e-08  ;;  %v1409_v6 = vmul.f32 %v2265_v59, %v2656_v34  ;;  %v2810_v49 = vpop.f32.mrf.mxu0  ;;  %v1671_v50 = vld [vmem:[%s2653_s8 + $0x50] sm:$0xff] }
  0xff   : > { %v2267_v7 = vpop.eup %2266  ;;  %1759 = vst [vmem:[%s2741_s7 + $0x10] sm:$0xff] %v1727_v60  ;;  %v1730_v25 = vadd.f32 %v1698_v22, %v2682_v51  ;;  %v1418_v52 = vsel %vm1417_vm14, %v2640_v29, %v1416_v0  ;;  %v2171_v11 = vpop.f32.mrf.mxu1  ;;  %vm1447_vm7 = vcmp.eq.f32.partialorder %v2713_v2, 0.0  ;;  %v1448_v12 = vand.u32 2147483648, %v2713_v2 }
 0x100   : > { %v1729_v15 = vadd.f32 %v1697_v3, %v2703_v61  ;;  %v1421_v17 = vsel %vm1419_vm15, %v1420_v62, %v1418_v52  ;;  %2280 = vrsqrt.f32 %v2806_v5  ;;  %v1411_v51 = vsel %vm1410_vm0, %v2656_v34, %v1409_v6  ;;  %v2829_v18 = vpop.f32.mrf.mxu0 }
 0x101   : > { %v2269_v20 = vpop.eup %2268  ;;  %1762 = vst [vmem:[%s2741_s7 + $0x28] sm:$0xff] %v1730_v25  ;;  %v1700_v24 = vmul.f32 %v1668_v4, %v1421_v17  ;;  %v1414_v61 = vsel %vm1412_vm1, %v1413_v8, %v1411_v51  ;;  %v2836_v27 = vmax.f32 %v2171_v11, 1e-08  ;;  %v1430_v29 = vmul.f32 %v2267_v7, %v2670_v42  ;;  %v1156_v62 = vpop.f32.mrf.mxu1  ;;  %v1674_v17 = vld [vmem:[%s2653_s8 + $0x68] sm:$0xff] }
 0x102   : > { %1761 = vst [vmem:[%s2741_s7 + $0x20] sm:$0xff] %v1729_v15  ;;  %v1699_v28 = vmul.f32 %v1667_v10, %v1414_v61  ;;  %v2841_v33 = vmax.f32 %v1156_v62, 1e-08  ;;  %v1423_v35 = vmul.f32 %v2269_v20, %v2693_v54  ;;  %v1640_v16 = vadd.f32 %v2728_v13, %v2637_v26  ;;  %v2846_v36 = vpop.f32.mrf.mxu0 }
 0x103   : > { %v2271_v34 = vpop.eup %2270  ;;  %v1732_v8 = vadd.f32 %v1700_v24, %v2707_v63  ;;  %2282 = vrsqrt.f32 %v2836_v27  ;;  %v1432_v38 = vsel %vm1431_vm2, %v2670_v42, %v1430_v29  ;;  %v2174_v43 = vpop.f32.mrf.mxu1  ;;  %vm1438_vm8 = vcmp.eq.f32.partialorder %v2725_v14, inf }
 0x104   : > { %v1731_v46 = vadd.f32 %v1699_v28, %v2721_v9  ;;  %v1435_v13 = vsel %vm1433_vm3, %v1434_v21, %v1432_v38  ;;  %2284 = vrsqrt.f32 %v2841_v33  ;;  %v1425_v63 = vsel %vm1424_vm4, %v2693_v54, %v1423_v35  ;;  %v2864_v47 = vpop.f32.mrf.mxu0  ;;  %v1673_v35 = vld [vmem:[%s2653_s8 + $0x60] sm:$0xff] }
 0x105   : > { %v2273_v48 = vpop.eup %2272  ;;  %1764 = vst [vmem:[%s2741_s7 + $0x38] sm:$0xff] %v1732_v8  ;;  %v1702_v19 = vmul.f32 %v1670_v32, %v1435_v13  ;;  %v1428_v9 = vsel %vm1426_vm5, %v1427_v37, %v1425_v63  ;;  %v2871_v44 = vmax.f32 %v2174_v43, 1e-08  ;;  %v1444_v42 = vmul.f32 %v2271_v34, %v2713_v2  ;;  %v1166_v21 = vpop.f32.mrf.mxu1 }
 0x106   : > { %1763 = vst [vmem:[%s2741_s7 + $0x30] sm:$0xff] %v1731_v46  ;;  %v1701_v53 = vmul.f32 %v1669_v39, %v1428_v9  ;;  %v2876_v56 = vmax.f32 %v1166_v21, 1e-08  ;;  %v1437_v59 = vmul.f32 %v2273_v48, %v2725_v14  ;;  %vm1440_vm9 = vcmp.eq.f32.partialorder %v2725_v14, 0.0  ;;  %v2887_v1 = vpop.f32.mrf.mxu0  ;;  %v1676_v9 = vld [vmem:[%s2653_s8 + $0x78] sm:$0xff] }
 0x107   : > { %v2275_v60 = vpop.eup %2274  ;;  %v1734_v54 = vadd.f32 %v1702_v19, %v2738_v23  ;;  %2286 = vrsqrt.f32 %v2871_v44  ;;  %v1446_v37 = vsel %vm1445_vm6, %v2713_v2, %v1444_v42  ;;  %v1441_v22 = vand.u32 2147483648, %v2725_v14  ;;  %v2177_v0 = vpop.f32.mrf.mxu1 }
 0x108   : > { %v1733_v3 = vadd.f32 %v1701_v53, %v2782_v55  ;;  %v1449_v4 = vsel %vm1447_vm7, %v1448_v12, %v1446_v37  ;;  %2288 = vrsqrt.f32 %v2876_v56  ;;  %v1439_v23 = vsel %vm1438_vm8, %v2725_v14, %v1437_v59  ;;  %v2912_v20 = vpop.f32.mrf.mxu0 }
 0x109   : > { %v2277_v6 = vpop.eup %2276  ;;  %1766 = vst [vmem:[%s2741_s7 + $0x48] sm:$0xff] %v1734_v54  ;;  %v1704_v7 = vmul.f32 %v1672_v41, %v1449_v4  ;;  %v1442_v25 = vsel %vm1440_vm9, %v1441_v22, %v1439_v23  ;;  %v1639_v52 = vadd.f32 %v2637_v26, %v2754_v31  ;;  %v2901_v55 = vmax.f32 %v2177_v0, 1e-08  ;;  %v1176_v2 = vpop.f32.mrf.mxu1  ;;  %v1675_v22 = vld [vmem:[%s2653_s8 + $0x70] sm:$0xff] }
 0x10a   : > { %1765 = vst [vmem:[%s2741_s7 + $0x40] sm:$0xff] %v1733_v3  ;;  %v1703_v10 = vmul.f32 %v1671_v50, %v1442_v25  ;;  %v1458_v11 = vmul.f32 %v2275_v60, %v2751_v30  ;;  %vm1459_vm10 = vcmp.eq.f32.partialorder %v2751_v30, inf  ;;  %vm1461_vm11 = vcmp.eq.f32.partialorder %v2751_v30, 0.0  ;;  %v2932_v13 = vpop.f32.mrf.mxu0 }
 0x10b   : > { %v2279_v12 = vpop.eup %2278  ;;  %v1736_v15 = vadd.f32 %v1704_v7, %v1640_v16  ;;  %2290 = vrsqrt.f32 %v2901_v55  ;;  %v1462_v14 = vand.u32 2147483648, %v2751_v30  ;;  %v1642_v31 = vadd.f32 %v2772_v45, %v2637_v26  ;;  %v2180_v51 = vpop.f32.mrf.mxu1 }
 0x10c   : > { %v1735_v24 = vadd.f32 %v1703_v10, %v1639_v52  ;;  %v1460_v61 = vsel %vm1459_vm10, %v2751_v30, %v1458_v11  ;;  %v2915_v29 = vmax.f32 %v1176_v2, 1e-08  ;;  %v1451_v62 = vmul.f32 %v2277_v6, %v2768_v40  ;;  %v2950_v50 = vpop.f32.mrf.mxu0  ;;  %v1678_v11 = vld [vmem:[%s2653_s8 + $0x88] sm:$0xff] }
 0x10d   : > { %v2281_v28 = vpop.eup %2280  ;;  %1768 = vst [vmem:[%s2741_s7 + $0x58] sm:$0xff] %v1736_v15  ;;  %v1463_v32 = vsel %vm1461_vm11, %v1462_v14, %v1460_v61  ;;  %vm1452_vm12 = vcmp.eq.f32.partialorder %v2768_v40, inf  ;;  %vm1454_vm13 = vcmp.eq.f32.partialorder %v2768_v40, 0.0  ;;  %v1455_v45 = vand.u32 2147483648, %v2768_v40  ;;  %v1186_v16 = vpop.f32.mrf.mxu1  ;;  %v1677_v61 = vld [vmem:[%s2653_s8 + $0x80] sm:$0xff] }
 0x10e   : > { %1767 = vst [vmem:[%s2741_s7 + $0x50] sm:$0xff] %v1735_v24  ;;  %v1706_v34 = vmul.f32 %v1674_v17, %v1463_v32  ;;  %2292 = vrsqrt.f32 %v2915_v29  ;;  %v1453_v30 = vsel %vm1452_vm12, %v2768_v40, %v1451_v62  ;;  %v1641_v8 = vadd.f32 %v2637_v26, %v2795_v58 }
 0x10f   : > { %v1456_v38 = vsel %vm1454_vm13, %v1455_v45, %v1453_v30  ;;  %v2928_v39 = vmax.f32 %v2180_v51, 1e-08  ;;  %v1472_v43 = vmul.f32 %v2279_v12, %v2792_v57  ;;  %vm1473_vm14 = vcmp.eq.f32.partialorder %v2792_v57, inf  ;;  %v2183_v46 = vpop.f32.mrf.mxu1 }
 0x110   : > { %v2283_v63 = vpop.eup %2282  ;;  %v1738_v48 = vadd.f32 %v1706_v34, %v1642_v31  ;;  %v1705_v19 = vmul.f32 %v1673_v35, %v1456_v38  ;;  %vm1475_vm15 = vcmp.eq.f32.partialorder %v2792_v57, 0.0  ;;  %v1476_v40 = vand.u32 2147483648, %v2792_v57  ;;  %v2972_v31 = vpop.f32.mrf.mxu0 }
 0x111   : > { %v2285_v58 = vpop.eup %2284  ;;  %2294 = vrsqrt.f32 %v2928_v39  ;;  %v1474_v42 = vsel %vm1473_vm14, %v2792_v57, %v1472_v43  ;;  %v1644_v21 = vadd.f32 %v2810_v49, %v2637_v26  ;;  %v2941_v53 = vmax.f32 %v1186_v16, 1e-08  ;;  %v1196_v41 = vpop.f32.mrf.mxu1 }
 0x112   : > { %1770 = vst [vmem:[%s2741_s7 + $0x68] sm:$0xff] %v1738_v48  ;;  %v1737_v59 = vadd.f32 %v1705_v19, %v1641_v8  ;;  %v1477_v60 = vsel %vm1475_vm15, %v1476_v40, %v1474_v42  ;;  %v1465_v54 = vmul.f32 %v2281_v28, %v2806_v5  ;;  %vm1466_vm0 = vcmp.eq.f32.partialorder %v2806_v5, inf  ;;  %v2989_v43 = vpop.f32.mrf.mxu0 }
 0x113   : > { %v1708_v37 = vmul.f32 %v1676_v9, %v1477_v60  ;;  %2296 = vrsqrt.f32 %v2941_v53  ;;  %vm1468_vm1 = vcmp.eq.f32.partialorder %v2806_v5, 0.0  ;;  %v1469_v57 = vand.u32 2147483648, %v2806_v5  ;;  %v2186_v49 = vpop.f32.mrf.mxu1 }
 0x114   : > { %v2287_v0 = vpop.eup %2286  ;;  %1769 = vst [vmem:[%s2741_s7 + $0x60] sm:$0xff] %v1737_v59  ;;  %v1467_v3 = vsel %vm1466_vm0, %v2806_v5, %v1465_v54  ;;  %v1643_v4 = vadd.f32 %v2637_v26, %v2829_v18  ;;  %v2956_v23 = vmax.f32 %v2183_v46, 1e-08  ;;  %v1486_v6 = vmul.f32 %v2283_v63, %v2836_v27  ;;  %v3011_v54 = vpop.f32.mrf.mxu0 }
 0x115   : > { %v2289_v7 = vpop.eup %2288  ;;  %v1740_v25 = vadd.f32 %v1708_v37, %v1644_v21  ;;  %v1470_v52 = vsel %vm1468_vm1, %v1469_v57, %v1467_v3  ;;  %vm1487_vm2 = vcmp.eq.f32.partialorder %v2836_v27, inf  ;;  %vm1489_vm3 = vcmp.eq.f32.partialorder %v2836_v27, 0.0  ;;  %v1206_v2 = vpop.f32.mrf.mxu1  ;;  %v1679_v21 = vld [vmem:[%s2653_s8 + $0x90] sm:$0xff]  ;;  %v1682_v3 = vld [vmem:[%s2653_s8 + $0xa8] sm:$0xff] }
 0x116   : > { %v1707_v10 = vmul.f32 %v1675_v22, %v1470_v52  ;;  %2298 = vrsqrt.f32 %v2956_v23  ;;  %v1488_v5 = vsel %vm1487_vm2, %v2836_v27, %v1486_v6  ;;  %v1490_v18 = vand.u32 2147483648, %v2836_v27 }
 0x117   : > { %1772 = vst [vmem:[%s2741_s7 + $0x78] sm:$0xff] %v1740_v25  ;;  %v1646_v12 = vadd.f32 %v2846_v36, %v2637_v26  ;;  %v2968_v15 = vmax.f32 %v1196_v41, 1e-08  ;;  %v1479_v14 = vmul.f32 %v2285_v58, %v2841_v33  ;;  %vm1480_vm4 = vcmp.eq.f32.partialorder %v2841_v33, inf  ;;  %v2189_v62 = vpop.f32.mrf.mxu1 }
 0x118   : > { %v2291_v17 = vpop.eup %2290  ;;  %v1739_v51 = vadd.f32 %v1707_v10, %v1643_v4  ;;  %v1491_v24 = vsel %vm1489_vm3, %v1490_v18, %v1488_v5  ;;  %vm1482_vm5 = vcmp.eq.f32.partialorder %v2841_v33, 0.0  ;;  %v1483_v27 = vand.u32 2147483648, %v2841_v33  ;;  %v739_v5 = vpop.f32.mrf.mxu0 }
 0x119   : > { %v1710_v36 = vmul.f32 %v1678_v11, %v1491_v24  ;;  %2300 = vrsqrt.f32 %v2968_v15  ;;  %v1481_v28 = vsel %vm1480_vm4, %v2841_v33, %v1479_v14  ;;  %v1645_v32 = vadd.f32 %v2637_v26, %v2864_v47  ;;  %v1680_v33 = vld [vmem:[%s2653_s8 + $0x98] sm:$0xff]  ;;  %v1216_v48 = vpop.f32.mrf.mxu1 }
 0x11a   : > { %1771 = vst [vmem:[%s2741_s7 + $0x70] sm:$0xff] %v1739_v51  ;;  %v1484_v45 = vsel %vm1482_vm5, %v1483_v27, %v1481_v28  ;;  %v2982_v35 = vmax.f32 %v2186_v49, 1e-08  ;;  %v1500_v16 = vmul.f32 %v2287_v0, %v2871_v44  ;;  %vm1501_vm6 = vcmp.eq.f32.partialorder %v2871_v44, inf }
 0x11b   : > { %v2293_v34 = vpop.eup %2292  ;;  %v1742_v30 = vadd.f32 %v1710_v36, %v1646_v12  ;;  %v1709_v8 = vmul.f32 %v1677_v61, %v1484_v45  ;;  %vm1503_vm7 = vcmp.eq.f32.partialorder %v2871_v44, 0.0  ;;  %v1504_v38 = vand.u32 2147483648, %v2871_v44  ;;  %v2192_v49 = vpop.f32.mrf.mxu1 }
 0x11c   : > { %2302 = vrsqrt.f32 %v2982_v35  ;;  %v1502_v47 = vsel %vm1501_vm6, %v2871_v44, %v1500_v16  ;;  %v1648_v46 = vadd.f32 %v2887_v1, %v2637_v26  ;;  %v2995_v63 = vmax.f32 %v1206_v2, 1e-08 }
 0x11d   : > { %1774 = vst [vmem:[%s2741_s7 + $0x88] sm:$0xff] %v1742_v30  ;;  %v1741_v19 = vadd.f32 %v1709_v8, %v1645_v32  ;;  %v1505_v40 = vsel %vm1503_vm7, %v1504_v38, %v1502_v47  ;;  %v1493_v9 = vmul.f32 %v2289_v7, %v2876_v56  ;;  %vm1494_vm8 = vcmp.eq.f32.partialorder %v2876_v56, inf  ;;  %v1226_v12 = vpop.f32.mrf.mxu1  ;;  %v2128_v32 = vpop.f32.mrf.mxu0 }
 0x11e   : > { %v2295_v58 = vpop.eup %2294  ;;  %v1712_v42 = vmul.f32 %v1680_v33, %v1505_v40  ;;  %2304 = vrsqrt.f32 %v2995_v63  ;;  %vm1496_vm9 = vcmp.eq.f32.partialorder %v2876_v56, 0.0  ;;  %v1497_v44 = vand.u32 2147483648, %v2876_v56 }
 0x11f   : > { %1773 = vst [vmem:[%s2741_s7 + $0x80] sm:$0xff] %v1741_v19  ;;  %v1495_v1 = vsel %vm1494_vm8, %v2876_v56, %v1493_v9  ;;  %v1647_v41 = vadd.f32 %v2637_v26, %v2912_v20  ;;  %v3008_v59 = vmax.f32 %v2189_v62, 1e-08  ;;  %v1514_v60 = vmul.f32 %v2291_v17, %v2901_v55  ;;  %v1684_v62 = vld [vmem:[%s2653_s8 + $0xb8] sm:$0xff]  ;;  %v1686_v9 = vld [vmem:[%s2653_s8 + $0xc8] sm:$0xff] }
 0x120   : > { %v2297_v37 = vpop.eup %2296  ;;  %v1744_v57 = vadd.f32 %v1712_v42, %v1648_v46  ;;  %v1498_v22 = vsel %vm1496_vm9, %v1497_v44, %v1495_v1  ;;  %vm1515_vm10 = vcmp.eq.f32.partialorder %v2901_v55, inf  ;;  %vm1517_vm11 = vcmp.eq.f32.partialorder %v2901_v55, 0.0 }
 0x121   : > { %v1711_v56 = vmul.f32 %v1679_v21, %v1498_v22  ;;  %2306 = vrsqrt.f32 %v3008_v59  ;;  %v1516_v20 = vsel %vm1515_vm10, %v2901_v55, %v1514_v60  ;;  %v1518_v0 = vand.u32 2147483648, %v2901_v55  ;;  %v1681_v55 = vld [vmem:[%s2653_s8 + $0xa0] sm:$0xff] }
 0x122   : > { %1776 = vst [vmem:[%s2741_s7 + $0x98] sm:$0xff] %v1744_v57  ;;  %v1650_v4 = vadd.f32 %v2932_v13, %v2637_v26  ;;  %v3022_v6 = vmax.f32 %v1216_v48, 1e-08  ;;  %v1507_v7 = vmul.f32 %v2293_v34, %v2915_v29  ;;  %vm1508_vm12 = vcmp.eq.f32.partialorder %v2915_v29, inf }
 0x123   : > { %v2299_v25 = vpop.eup %2298  ;;  %v1743_v52 = vadd.f32 %v1711_v56, %v1647_v41  ;;  %v1519_v2 = vsel %vm1517_vm11, %v1518_v0, %v1516_v20  ;;  %vm1510_vm13 = vcmp.eq.f32.partialorder %v2915_v29, 0.0  ;;  %v1511_v10 = vand.u32 2147483648, %v2915_v29  ;;  %v1685_v41 = vld [vmem:[%s2653_s8 + $0xc0] sm:$0xff] }
 0x124   : > { %v1714_v18 = vmul.f32 %v1682_v3, %v1519_v2  ;;  %2308 = vrsqrt.f32 %v3022_v6  ;;  %v1509_v13 = vsel %vm1508_vm12, %v2915_v29, %v1507_v7  ;;  %v1649_v11 = vadd.f32 %v2637_v26, %v2950_v50 }
 0x125   : > { %1775 = vst [vmem:[%s2741_s7 + $0x90] sm:$0xff] %v1743_v52  ;;  %v1512_v14 = vsel %vm1510_vm13, %v1511_v10, %v1509_v13  ;;  %v3034_v17 = vmax.f32 %v2192_v49, 1e-08  ;;  %v1528_v51 = vmul.f32 %v2295_v58, %v2928_v39  ;;  %vm1529_vm14 = vcmp.eq.f32.partialorder %v2928_v39, inf  ;;  %v749_v58 = vpop.f32.mrf.mxu0 }
 0x126   : > { %v2301_v24 = vpop.eup %2300  ;;  %v1746_v27 = vadd.f32 %v1714_v18, %v1650_v4  ;;  %v1713_v61 = vmul.f32 %v1681_v55, %v1512_v14  ;;  %vm1531_vm15 = vcmp.eq.f32.partialorder %v2928_v39, 0.0  ;;  %v1532_v29 = vand.u32 2147483648, %v2928_v39  ;;  %v1687_v18 = vld [vmem:[%s2653_s8 + $0xd0] sm:$0xff] }
 0x127   : > { %2310 = vrsqrt.f32 %v3034_v17  ;;  %v1530_v50 = vsel %vm1529_vm14, %v2928_v39, %v1528_v51  ;;  %v1652_v36 = vadd.f32 %v2972_v31, %v2637_v26  ;;  %v3045_v28 = vmax.f32 %v1226_v12, 1e-08  ;;  %v1683_v31 = vld [vmem:[%s2653_s8 + $0xb0] sm:$0xff]  ;;  %v2131_v56 = vpop.f32.mrf.mxu0 }
 0x128   : > { %1778 = vst [vmem:[%s2741_s7 + $0xa8] sm:$0xff] %v1746_v27  ;;  %v1745_v45 = vadd.f32 %v1713_v61, %v1649_v11  ;;  %v1533_v16 = vsel %vm1531_vm15, %v1532_v29, %v1530_v50  ;;  %v1521_v34 = vmul.f32 %v2297_v37, %v2941_v53  ;;  %vm1522_vm0 = vcmp.eq.f32.partialorder %v2941_v53, inf  ;;  %v1690_v61 = vld [vmem:[%s2653_s8 + $0xe8] sm:$0xff] }
 0x129   : > { %v2303_v30 = vpop.eup %2302  ;;  %v1716_v8 = vmul.f32 %v1684_v62, %v1533_v16  ;;  %2312 = vrsqrt.f32 %v3045_v28  ;;  %vm1524_vm1 = vcmp.eq.f32.partialorder %v2941_v53, 0.0  ;;  %v1525_v39 = vand.u32 2147483648, %v2941_v53  ;;  %v759_v12 = vpop.f32.mrf.mxu0  ;;  %v1689_v16 = vld [vmem:[%s2653_s8 + $0xe0] sm:$0xff] }
 0x12a   : > { %1777 = vst [vmem:[%s2741_s7 + $0xa0] sm:$0xff] %v1745_v45  ;;  %v1523_v38 = vsel %vm1522_vm0, %v2941_v53, %v1521_v34  ;;  %v1651_v33 = vadd.f32 %v2637_v26, %v2989_v43  ;;  %v1542_v47 = vmul.f32 %v2299_v25, %v2956_v23  ;;  %vm1543_vm2 = vcmp.eq.f32.partialorder %v2956_v23, inf }
 0x12b   : > { %v2305_v46 = vpop.eup %2304  ;;  %v1748_v48 = vadd.f32 %v1716_v8, %v1652_v36  ;;  %v1526_v19 = vsel %vm1524_vm1, %v1525_v39, %v1523_v38  ;;  %vm1545_vm3 = vcmp.eq.f32.partialorder %v2956_v23, 0.0  ;;  %v1546_v40 = vand.u32 2147483648, %v2956_v23 }
 0x12c   : > { %v1715_v42 = vmul.f32 %v1683_v31, %v1526_v19  ;;  %v1544_v53 = vsel %vm1543_vm2, %v2956_v23, %v1542_v47  ;;  %v1654_v43 = vadd.f32 %v3011_v54, %v2637_v26  ;;  %v1535_v44 = vmul.f32 %v2301_v24, %v2968_v15 }
 0x12d   : > { %1780 = vst [vmem:[%s2741_s7 + $0xb8] sm:$0xff] %v1748_v48  ;;  %v1547_v21 = vsel %vm1545_vm3, %v1546_v40, %v1544_v53  ;;  %vm1536_vm4 = vcmp.eq.f32.partialorder %v2968_v15, inf  ;;  %vm1538_vm5 = vcmp.eq.f32.partialorder %v2968_v15, 0.0  ;;  %v1539_v1 = vand.u32 2147483648, %v2968_v15  ;;  %v1692_v48 = vld [vmem:[%s2653_s8 + $0xf8] sm:$0xff] }
 0x12e   : > { %v2307_v60 = vpop.eup %2306  ;;  %v1747_v37 = vadd.f32 %v1715_v42, %v1651_v33  ;;  %v1718_v57 = vmul.f32 %v1686_v9, %v1547_v21  ;;  %v1537_v23 = vsel %vm1536_vm4, %v2968_v15, %v1535_v44  ;;  %v1653_v54 = vadd.f32 %v2637_v26, %v739_v5  ;;  %v1688_v15 = vld [vmem:[%s2653_s8 + $0xd8] sm:$0xff] }
 0x12f   : > { %v1540_v22 = vsel %vm1538_vm5, %v1539_v1, %v1537_v23  ;;  %v1556_v49 = vmul.f32 %v2303_v30, %v2982_v35  ;;  %vm1557_vm6 = vcmp.eq.f32.partialorder %v2982_v35, inf  ;;  %vm1559_vm7 = vcmp.eq.f32.partialorder %v2982_v35, 0.0 }
 0x130   : > { %1779 = vst [vmem:[%s2741_s7 + $0xb0] sm:$0xff] %v1747_v37  ;;  %v1750_v20 = vadd.f32 %v1718_v57, %v1654_v43  ;;  %v1717_v0 = vmul.f32 %v1685_v41, %v1540_v22  ;;  %v1560_v3 = vand.u32 2147483648, %v2982_v35  ;;  %v1656_v4 = vadd.f32 %v2128_v32, %v2637_v26  ;;  %v1691_v43 = vld [vmem:[%s2653_s8 + $0xf0] sm:$0xff] }
 0x131   : > { %v2309_v7 = vpop.eup %2308  ;;  %v1558_v25 = vsel %vm1557_vm6, %v2982_v35, %v1556_v49  ;;  %v1549_v52 = vmul.f32 %v2305_v46, %v2995_v63  ;;  %vm1550_vm8 = vcmp.eq.f32.partialorder %v2995_v63, inf  ;;  %vm1552_vm9 = vcmp.eq.f32.partialorder %v2995_v63, 0.0 }
 0x132   : > { %1782 = vst [vmem:[%s2741_s7 + $0xc8] sm:$0xff] %v1750_v20  ;;  %v1749_v2 = vadd.f32 %v1717_v0, %v1653_v54  ;;  %v1561_v10 = vsel %vm1559_vm7, %v1560_v3, %v1558_v25  ;;  %v1553_v55 = vand.u32 2147483648, %v2995_v63  ;;  %v1655_v5 = vadd.f32 %v2637_v26, %v749_v58 }
 0x133   : > { %v1720_v13 = vmul.f32 %v1688_v15, %v1561_v10  ;;  %v1551_v11 = vsel %vm1550_vm8, %v2995_v63, %v1549_v52  ;;  %v1570_v35 = vmul.f32 %v2307_v60, %v3008_v59  ;;  %vm1571_vm10 = vcmp.eq.f32.partialorder %v3008_v59, inf }
 0x134   : > { %v2311_v14 = vpop.eup %2310  ;;  %1781 = vst [vmem:[%s2741_s7 + $0xc0] sm:$0xff] %v1749_v2  ;;  %v1554_v51 = vsel %vm1552_vm9, %v1553_v55, %v1551_v11  ;;  %vm1573_vm11 = vcmp.eq.f32.partialorder %v3008_v59, 0.0  ;;  %v1574_v24 = vand.u32 2147483648, %v3008_v59  ;;  %v1658_v27 = vadd.f32 %v2131_v56, %v2637_v26 }
 0x135   : > { %v1752_v29 = vadd.f32 %v1720_v13, %v1656_v4  ;;  %v1719_v62 = vmul.f32 %v1687_v18, %v1554_v51  ;;  %v1572_v63 = vsel %vm1571_vm10, %v3008_v59, %v1570_v35  ;;  %v1563_v50 = vmul.f32 %v2309_v7, %v3022_v6  ;;  %v2134_v59 = vpop.f32.mrf.mxu0 }
 0x136   : > { %v2313_v36 = vpop.eup %2312  ;;  %v1575_v32 = vsel %vm1573_vm11, %v1574_v24, %v1572_v63  ;;  %vm1564_vm12 = vcmp.eq.f32.partialorder %v3022_v6, inf  ;;  %v1567_v45 = vand.u32 2147483648, %v3022_v6  ;;  %vm1566_vm13 = vcmp.eq.f32.partialorder %v3022_v6, 0.0 }
 0x137   : > { %1784 = vst [vmem:[%s2741_s7 + $0xd8] sm:$0xff] %v1752_v29  ;;  %v1751_v34 = vadd.f32 %v1719_v62, %v1655_v5  ;;  %v1722_v30 = vmul.f32 %v1690_v61, %v1575_v32  ;;  %v1565_v8 = vsel %vm1564_vm12, %v3022_v6, %v1563_v50  ;;  %v1657_v31 = vadd.f32 %v2637_v26, %v759_v12  ;;  %v769_v42 = vpop.f32.mrf.mxu0 }
 0x138   : > { %v1568_v39 = vsel %vm1566_vm13, %v1567_v45, %v1565_v8  ;;  %v1584_v38 = vmul.f32 %v2311_v14, %v3034_v17  ;;  %vm1585_vm14 = vcmp.eq.f32.partialorder %v3034_v17, inf  ;;  %v1588_v46 = vand.u32 2147483648, %v3034_v17 }
 0x139   : > { %1783 = vst [vmem:[%s2741_s7 + $0xd0] sm:$0xff] %v1751_v34  ;;  %v1754_v33 = vadd.f32 %v1722_v30, %v1658_v27  ;;  %v1721_v47 = vmul.f32 %v1689_v16, %v1568_v39  ;;  %vm1587_vm15 = vcmp.eq.f32.partialorder %v3034_v17, 0.0  ;;  %v1660_v6 = vadd.f32 %v2134_v59, %v2637_v26 }
 0x13a   : > { %v1586_v19 = vsel %vm1585_vm14, %v3034_v17, %v1584_v38  ;;  %v1577_v40 = vmul.f32 %v2313_v36, %v3045_v28  ;;  %vm1578_vm0 = vcmp.eq.f32.partialorder %v3045_v28, inf  ;;  %v1581_v53 = vand.u32 2147483648, %v3045_v28 }
 0x13b   : > { %1786 = vst [vmem:[%s2741_s7 + $0xe8] sm:$0xff] %v1754_v33  ;;  %v1753_v9 = vadd.f32 %v1721_v47, %v1657_v31  ;;  %v1589_v58 = vsel %vm1587_vm15, %v1588_v46, %v1586_v19  ;;  %vm1580_vm1 = vcmp.eq.f32.partialorder %v3045_v28, 0.0  ;;  %v1659_v41 = vadd.f32 %v2637_v26, %v769_v42 }
 0x13c   : > { %v1724_v44 = vmul.f32 %v1692_v48, %v1589_v58  ;;  %v1579_v21 = vsel %vm1578_vm0, %v3045_v28, %v1577_v40 }
 0x13d   : > { %1785 = vst [vmem:[%s2741_s7 + $0xe0] sm:$0xff] %v1753_v9  ;;  %v1582_v17 = vsel %vm1580_vm1, %v1581_v53, %v1579_v21 }
 0x13e   : > { %v1756_v1 = vadd.f32 %v1724_v44, %v1660_v6  ;;  %v1723_v60 = vmul.f32 %v1691_v43, %v1582_v17 }
 0x140   : > { %1788 = vst [vmem:[%s2741_s7 + $0xf8] sm:$0xff] %v1756_v1  ;;  %v1755_v28 = vadd.f32 %v1723_v60, %v1659_v41 }
 0x142   : > { %1787 = vst [vmem:[%s2741_s7 + $0xf0] sm:$0xff] %v1755_v28 }
 0x143   : > { %2327 = shalt.err (!%p2324_p5)
}
 0x144   : > { %s2328_s27 = scalar_lea.hbm %s3128_s15, 4096  ;;  %s2332_s9 = scalar_lea.hbm %s3186_s5, 8192 }
 0x145   : > { %p2329_p6 = scmp.ne.s32.totalorder %s3128_s15, %s2328_s27  ;;  %p2333_p10 = scmp.lt.s32.totalorder %s3128_s15, %s3186_s5 }
 0x146   : > { %p2334_p11 = scmp.lt.s32.totalorder %s2332_s9, %s2328_s27 }
 0x147   : > { %p2330_p7 = pnand %p2329_p6, %p2465_p4 }
 0x148   : > { %p2335_p12 = por %p2334_p11, %p2333_p10 }
 0x149   : > { %p2331_p9 = pneg %p2330_p7 }
 0x14b   : > { %p2336_p13 = pnand %p2335_p12, %p2331_p9 }
 0x14d   : > { %2339 = shalt.err (!%p2336_p13)
}
 0x14e   : > { %s2393_s10 = smov 128   ;;  %s2394_s13 = smov 8  }
 0x14f   : > { %2193 = dma.vmem_to_hbm [thread:$0]  (%p2465_p4), %s3130_s12, 4096, %s3128_s15, %s3136_s21, %s2393_s10, %s2393_s10, %s2394_s13  }
 0x150 PF: > { %p2199_p0 = scmp.ge.s32.totalorder %s2390_s23, 2  ;;  %s1818_s14 = sand.u32 1, %s2370_s18  }
 0x151   : > { %s1819_s16 = scalar_lea.sflag [#allocation5], %s1818_s14 }
 0x152   : > { %p2196_p1 = pnand %p2199_p0, %p2472_p8 }
 0x154   : > { %p2197_p2 = pneg %p2196_p1 }
 0x156   : > { %2365 = dma.done.wait (%p2197_p2), %s1819_s16, 4096  }
 0x157   : > { %2367 = vsyncadd (%p2197_p2), %s1819_s16, 4294963200  ;;  %s18_s23 = sadd.s32 1, %s2390_s23   ;;  %s3189_s18 = smov %s2374_s19 }
 0x158   : > { %p15_p3 = scmp.ge.s32.totalorder %s18_s23, 4   ;;  %s3190_s19 = smov %s2378_s20 }
 0x159   : > { %s3191_s20 = smov %s2478_s6  ;;  %s3192_s21 = smov %s2386_s22 }
 0x15a   : > { %s3193_s22 = smov %s3195_s26  ;;  %17 = sbr.rel (!%p15_p3) target bundleno = 4 (0x4), region = 92 }
 0x15f   :  { %1824 = vsyncpa [#allocation5], 1 }
 0x160   :  { %1826 = vsyncpa [#allocation5 + $0x1], 1 }

</bundles_post_ra>
